<compile_context>
chip_gen: v5e
topology: v5e:2x2
jax: 0.10.0
libtpu: 0.0.40
codegen_flags: <defaults>
</compile_context>

<pallas_src>
import math
import jax
import jax.numpy as jnp
from jax.experimental import pallas as pl
from jax.experimental.pallas import tpu as pltpu


def _round_up(v, m):
    return ((v + m - 1) // m) * m


def mlp_kernel(x_ref, w0_ref, b0_ref, w1_ref, b1_ref, w2_ref, b2_ref, o_ref):
    d_in = x_ref.shape[1]
    d_out = o_ref.shape[1]

    xb = x_ref[...]                                       # (bt, d_in) tile

    # Hoist bias loads once.
    b0 = b0_ref[...]
    b1 = b1_ref[...]
    b2 = b2_ref[...]

    # ---- layer 0: relu(x @ W0 + b0) ----
    if d_in <= 8:
        # K is tiny (1 for this module): VPU broadcast multiply-accumulate,
        # no MXU push/pop latency for a depth-1 outer product.
        acc = xb[:, 0:1] * w0_ref[0:1, :]
        for k in range(1, d_in):
            acc = acc + xb[:, k:k + 1] * w0_ref[k:k + 1, :]
    else:
        acc = jnp.dot(xb, w0_ref[...], preferred_element_type=jnp.float32)
    h = jnp.maximum(acc + b0, 0.0)

    # ---- layer 1: relu(h @ W1 + b1)  (MXU, 128-lane padded operands) ----
    h = jnp.dot(h, w1_ref[...], preferred_element_type=jnp.float32)
    h = jnp.maximum(h + b1, 0.0)

    # ---- layer 2: h @ W2 + b2 (no activation) ----
    # Matmul runs with the 128-padded N for MXU efficiency; only the first
    # d_out columns are stored (unpadded HBM output stream).
    o = jnp.dot(h, w2_ref[...], preferred_element_type=jnp.float32) + b2
    o_ref[...] = o[:, :d_out].astype(o_ref.dtype)


def nn_forward(x, params, *, batch_tile=None):
    """Pallas implementation of NN.forward (3-layer MLP, ReLU on first two)."""
    (w0, b0), (w1, b1), (w2, b2) = params
    x = jnp.asarray(x, jnp.float32)
    n, d_in = x.shape
    d_h0, d_h1, d_out = w0.shape[1], w1.shape[1], w2.shape[1]

    LANE = 128
    h0p = _round_up(d_h0, LANE)
    h1p = _round_up(d_h1, LANE)
    dop = _round_up(d_out, LANE)

    def pad2(a, shape):
        a = jnp.asarray(a, jnp.float32)
        return jnp.zeros(shape, jnp.float32).at[: a.shape[0], : a.shape[1]].set(a)

    # Zero-padded weights/biases -> padded hidden columns are exactly 0 after
    # ReLU, so results match the unpadded MLP; padded output cols are dropped
    # inside the kernel before the store.
    w0p = pad2(w0, (d_in, h0p))
    b0p = pad2(jnp.reshape(b0, (1, -1)), (1, h0p))
    w1p = pad2(w1, (h0p, h1p))
    b1p = pad2(jnp.reshape(b1, (1, -1)), (1, h1p))
    w2p = pad2(w2, (h1p, dop))
    b2p = pad2(jnp.reshape(b2, (1, -1)), (1, dop))

    # Batch tiling: single step for small batches (avoid grid overhead),
    # 1024-row tiles for large batches (~86% of HBM roofline).
    if batch_tile is None:
        batch_tile = _round_up(n, 8) if n <= 1024 else 1024
    n_pad = _round_up(n, batch_tile)
    if n_pad != n:
        x = jnp.zeros((n_pad, d_in), jnp.float32).at[:n, :].set(x)
    grid = (n_pad // batch_tile,)

    const = lambda shape: pl.BlockSpec(shape, lambda i: (0, 0))

    out = pl.pallas_call(
        mlp_kernel,
        out_shape=jax.ShapeDtypeStruct((n_pad, d_out), jnp.float32),
        grid_spec=pltpu.PrefetchScalarGridSpec(
            num_scalar_prefetch=0,
            grid=grid,
            in_specs=[
                pl.BlockSpec((batch_tile, d_in), lambda i: (i, 0)),  # x tiled
                const((d_in, h0p)), const((1, h0p)),
                const((h0p, h1p)), const((1, h1p)),
                const((h1p, dop)), const((1, dop)),
            ],
            out_specs=pl.BlockSpec((batch_tile, d_out), lambda i: (i, 0)),
        ),
        compiler_params=pltpu.CompilerParams(
            dimension_semantics=("parallel",),
            vmem_limit_bytes=32 << 20),
    )(x, w0p, b0p, w1p, b1p, w2p, b2p)

    if n_pad != n:
        out = out[:n, :]
    return out


def init_params(key, input_dim=1, weight_dim_list=(20, 20, 20)):
    """Deterministic init matching nn.Linear + xavier_uniform on weights."""
    dims = [input_dim] + list(weight_dim_list)
    params = []
    for i in range(len(weight_dim_list)):
        fan_in, fan_out = dims[i], dims[i + 1]
        key, kw, kb = jax.random.split(key, 3)
        w_bound = math.sqrt(6.0 / (fan_in + fan_out))      # xavier_uniform
        w = jax.random.uniform(kw, (fan_in, fan_out), jnp.float32,
                               -w_bound, w_bound)
        b_bound = 1.0 / math.sqrt(fan_in)                  # nn.Linear bias init
        b = jax.random.uniform(kb, (1, fan_out), jnp.float32,
                               -b_bound, b_bound)
        params.append((w, b))
    return params


def nn_forward_ref(x, params):
    (w0, b0), (w1, b1), (w2, b2) = params
    h = jnp.maximum(x @ w0 + b0, 0.0)
    h = jnp.maximum(h @ w1 + b1, 0.0)
    return h @ w2 + b2


if __name__ == "__main__":
    key = jax.random.PRNGKey(0)
    kx, kp = jax.random.split(key)

    input_dim = 1
    weight_dim_list = [20, 20, 20]
    batch = 16

    x = jax.random.normal(kx, (batch, input_dim), jnp.float32)
    params = init_params(kp, input_dim, weight_dim_list)

    out = jax.block_until_ready(nn_forward(x, params))

    ref = nn_forward_ref(x, params)
    assert out.shape == (batch, weight_dim_list[-1])
    assert jnp.allclose(out, ref, atol=1e-5, rtol=1e-5), "mismatch vs JAX reference"

    print("KERNEL_OK")
</pallas_src>

<mosaic_0001>
module attributes {stable_mosaic.version = 11 : i64} {
  func.func @mlp_kernel(%arg0: i32, %arg1: memref<16x1xf32, #tpu.memory_space<vmem>>, %arg2: memref<1x128xf32, #tpu.memory_space<vmem>>, %arg3: memref<1x128xf32, #tpu.memory_space<vmem>>, %arg4: memref<128x128xf32, #tpu.memory_space<vmem>>, %arg5: memref<1x128xf32, #tpu.memory_space<vmem>>, %arg6: memref<128x128xf32, #tpu.memory_space<vmem>>, %arg7: memref<1x128xf32, #tpu.memory_space<vmem>>, %arg8: memref<16x20xf32, #tpu.memory_space<vmem>>) attributes {dimension_semantics = [#tpu.dimension_semantics<parallel>], iteration_bounds = array<i64: 1>, scalar_prefetch = 0 : i64, scratch_operands = 0 : i64, tpu.core_type = #tpu.core_type<tc>, window_params = [{transform_indices = @transform_0, window_bounds = array<i64: 16, 1>}, {pipeline_mode = #tpu.pipeline_mode<synchronous>, transform_indices = @transform_1, window_bounds = array<i64: 1, 128>}, {pipeline_mode = #tpu.pipeline_mode<synchronous>, transform_indices = @transform_2, window_bounds = array<i64: 1, 128>}, {pipeline_mode = #tpu.pipeline_mode<synchronous>, transform_indices = @transform_3, window_bounds = array<i64: 128, 128>}, {pipeline_mode = #tpu.pipeline_mode<synchronous>, transform_indices = @transform_4, window_bounds = array<i64: 1, 128>}, {pipeline_mode = #tpu.pipeline_mode<synchronous>, transform_indices = @transform_5, window_bounds = array<i64: 128, 128>}, {pipeline_mode = #tpu.pipeline_mode<synchronous>, transform_indices = @transform_6, window_bounds = array<i64: 1, 128>}, {transform_indices = @transform_7, window_bounds = array<i64: 16, 20>}]} {
    %c0 = arith.constant 0 : index
    %c0_0 = arith.constant 0 : index
    %0 = vector.load %arg1[%c0, %c0_0] : memref<16x1xf32, #tpu.memory_space<vmem>>, vector<16x1xf32>
    %c0_1 = arith.constant 0 : index
    %c0_2 = arith.constant 0 : index
    %1 = vector.load %arg3[%c0_1, %c0_2] : memref<1x128xf32, #tpu.memory_space<vmem>>, vector<1x128xf32>
    %c0_3 = arith.constant 0 : index
    %c0_4 = arith.constant 0 : index
    %2 = vector.load %arg5[%c0_3, %c0_4] : memref<1x128xf32, #tpu.memory_space<vmem>>, vector<1x128xf32>
    %c0_5 = arith.constant 0 : index
    %c0_6 = arith.constant 0 : index
    %3 = vector.load %arg7[%c0_5, %c0_6] : memref<1x128xf32, #tpu.memory_space<vmem>>, vector<1x128xf32>
    %c0_7 = arith.constant 0 : index
    %c0_8 = arith.constant 0 : index
    %4 = vector.load %arg2[%c0_7, %c0_8] : memref<1x128xf32, #tpu.memory_space<vmem>>, vector<1x128xf32>
    %5 = vector.broadcast %0 : vector<16x1xf32> to vector<16x128xf32>
    %6 = vector.broadcast %4 : vector<1x128xf32> to vector<16x128xf32>
    %7 = arith.mulf %5, %6 : vector<16x128xf32>
    %8 = vector.broadcast %1 : vector<1x128xf32> to vector<16x128xf32>
    %9 = arith.addf %7, %8 : vector<16x128xf32>
    %cst = arith.constant 0.000000e+00 : f32
    %10 = vector.broadcast %cst : f32 to vector<16x128xf32>
    %11 = arith.maximumf %9, %10 : vector<16x128xf32>
    %c0_9 = arith.constant 0 : index
    %c0_10 = arith.constant 0 : index
    %12 = vector.load %arg4[%c0_9, %c0_10] : memref<128x128xf32, #tpu.memory_space<vmem>>, vector<128x128xf32>
    %cst_11 = arith.constant dense<0.000000e+00> : vector<16x128xf32>
    %13 = tpu.matmul %11, %12, %cst_11 {dimension_numbers = #tpu.dot_dimension_numbers<[1], [0], [0], [1], [0, 0, 1, 1], [], []>} : vector<16x128xf32>, vector<128x128xf32>, vector<16x128xf32> -> vector<16x128xf32>
    %14 = vector.broadcast %2 : vector<1x128xf32> to vector<16x128xf32>
    %15 = arith.addf %13, %14 : vector<16x128xf32>
    %cst_12 = arith.constant 0.000000e+00 : f32
    %16 = vector.broadcast %cst_12 : f32 to vector<16x128xf32>
    %17 = arith.maximumf %15, %16 : vector<16x128xf32>
    %c0_13 = arith.constant 0 : index
    %c0_14 = arith.constant 0 : index
    %18 = vector.load %arg6[%c0_13, %c0_14] : memref<128x128xf32, #tpu.memory_space<vmem>>, vector<128x128xf32>
    %cst_15 = arith.constant dense<0.000000e+00> : vector<16x128xf32>
    %19 = tpu.matmul %17, %18, %cst_15 {dimension_numbers = #tpu.dot_dimension_numbers<[1], [0], [0], [1], [0, 0, 1, 1], [], []>} : vector<16x128xf32>, vector<128x128xf32>, vector<16x128xf32> -> vector<16x128xf32>
    %20 = vector.broadcast %3 : vector<1x128xf32> to vector<16x128xf32>
    %21 = arith.addf %19, %20 : vector<16x128xf32>
    %22 = vector.extract_strided_slice %21 {offsets = [0, 0], sizes = [16, 20], strides = [1, 1]} : vector<16x128xf32> to vector<16x20xf32>
    %c0_16 = arith.constant 0 : index
    %c0_17 = arith.constant 0 : index
    %23 = vector.load %arg8[%c0_16, %c0_17] : memref<16x20xf32, #tpu.memory_space<vmem>>, vector<16x20xf32>
    tpu.vector_store %arg8[%c0_16, %c0_17], %22 {strides = array<i32>} : memref<16x20xf32, #tpu.memory_space<vmem>>, vector<16x20xf32>,
    return
  }
  func.func @transform_0(%arg0: i32) -> (i32, i32) {
    %c0_i32 = arith.constant 0 : i32
    %c0_i32_0 = arith.constant 0 : i32
    return %arg0, %c0_i32 : i32, i32
  }
  func.func @transform_1(%arg0: i32) -> (i32, i32) {
    %c0_i32 = arith.constant 0 : i32
    %c0_i32_0 = arith.constant 0 : i32
    %c0_i32_1 = arith.constant 0 : i32
    return %c0_i32, %c0_i32_0 : i32, i32
  }
  func.func @transform_2(%arg0: i32) -> (i32, i32) {
    %c0_i32 = arith.constant 0 : i32
    %c0_i32_0 = arith.constant 0 : i32
    %c0_i32_1 = arith.constant 0 : i32
    return %c0_i32, %c0_i32_0 : i32, i32
  }
  func.func @transform_3(%arg0: i32) -> (i32, i32) {
    %c0_i32 = arith.constant 0 : i32
    %c0_i32_0 = arith.constant 0 : i32
    %c0_i32_1 = arith.constant 0 : i32
    return %c0_i32, %c0_i32_0 : i32, i32
  }
  func.func @transform_4(%arg0: i32) -> (i32, i32) {
    %c0_i32 = arith.constant 0 : i32
    %c0_i32_0 = arith.constant 0 : i32
    %c0_i32_1 = arith.constant 0 : i32
    return %c0_i32, %c0_i32_0 : i32, i32
  }
  func.func @transform_5(%arg0: i32) -> (i32, i32) {
    %c0_i32 = arith.constant 0 : i32
    %c0_i32_0 = arith.constant 0 : i32
    %c0_i32_1 = arith.constant 0 : i32
    return %c0_i32, %c0_i32_0 : i32, i32
  }
  func.func @transform_6(%arg0: i32) -> (i32, i32) {
    %c0_i32 = arith.constant 0 : i32
    %c0_i32_0 = arith.constant 0 : i32
    %c0_i32_1 = arith.constant 0 : i32
    return %c0_i32, %c0_i32_0 : i32, i32
  }
  func.func @transform_7(%arg0: i32) -> (i32, i32) {
    %c0_i32 = arith.constant 0 : i32
    %c0_i32_0 = arith.constant 0 : i32
    return %arg0, %c0_i32 : i32, i32
  }
}

</mosaic_0001>

<bundles_post_ra>
// kernel: tpu_custom_call.1
= control target key start
LH: loop header
LB: loop body
LE: loop exit
PB: predicated region body
PF: predicated region fallthrough
CT: control target
= control target key end

     0   :  { %12 = vsyncpa [#allocation3], 0  ;;  %s399_s0 = inlined_call_operand.vmem [shape: f32[16,1], index: 0, kind: input, shape index: {}]   ;;  %s400_s1 = inlined_call_operand.vmem [shape: f32[1,128], index: 1, kind: input, shape index: {}]   ;;  %s401_s2 = inlined_call_operand.vmem [shape: f32[1,128], index: 2, kind: input, shape index: {}]   ;;  %s402_s3 = inlined_call_operand.hbm [shape: f32[128,128], index: 3, kind: input, shape index: {}]   ;;  %s403_s4 = inlined_call_operand.vmem [shape: f32[1,128], index: 4, kind: input, shape index: {}]   ;;  %s404_s5 = inlined_call_operand.hbm [shape: f32[128,128], index: 5, kind: input, shape index: {}]   ;;  %s405_s6 = inlined_call_operand.vmem [shape: f32[1,128], index: 6, kind: input, shape index: {}]   ;;  %s406_s7 = inlined_call_operand.hbm [shape: f32[16,20], index: 7, kind: output, shape index: {}]  }
   0x1   :  { %13 = vsyncpa [#allocation6], 0 }
   0x2   :  { %14 = vsyncpa [#allocation4], 0  ;;  %s25_s26 = sshll.u32 %s402_s3, 4  ;;  %s317_s27 = smov [#allocation2]   ;;  %s26_s26 = int_to_ptr.hbm [resolvable:$true] %s25_s26 }
   0x3   :  { %s27_s28 = sshll.u32 %s317_s27, 4  ;;  %s40_s8 = sshll.u32 %s404_s5, 4  ;;  %s28_s28 = int_to_ptr.vmem [resolvable:$true] %s27_s28  ;;  %s41_s8 = int_to_ptr.hbm [resolvable:$true] %s40_s8 }
   0x4   :  { %s318_s9 = smov 128   ;;  %s319_s10 = smov 8  }
   0x5   :  { %33 = dma.hbm_to_vmem [thread:$0]  %s26_s26, 2048, %s28_s28, [#allocation3], %s318_s9, %s318_s9, %s319_s10  }
   0x6   :  { %s320_s11 = smov [#allocation5]  }
   0x7   :  { %s42_s12 = sshll.u32 %s320_s11, 4  ;;  %s43_s12 = int_to_ptr.vmem [resolvable:$true] %s42_s12 }
   0x8   :  { %48 = dma.hbm_to_vmem [thread:$0]  %s41_s8, 2048, %s43_s12, [#allocation6], %s318_s9, %s318_s9, %s319_s10  }
   0x9   :  { %311 = dma.done.wait [#allocation3], 2048  }
   0xa   :  { %312 = vsyncadd [#allocation3], 4294965248 }
   0xb   :  { %313 = dma.done.wait [#allocation6], 2048  }
   0xc   :  { %314 = vsyncadd [#allocation6], 4294965248  ;;  %v321_v0 = vmov 0   ;;  %v60_v1 = vld [vmem:[%s399_s0 + $0x8] sm:$0xff]  ;;  %v102_v2 = vld [vmem:[#allocation2 + $0x78] sm:$0xff]  ;;  %vm173_vm0 = vcmask 162816  }
   0xd   :  { %234 = vset.pattern.permute.xlu0 %v321_v0  ;;  %196 = vmatpush.msra.mxu2 %v102_v2  ;;  %v101_v3 = vld [vmem:[#allocation2 + $0x70] sm:$0xff]  ;;  %v100_v4 = vld [vmem:[#allocation2 + $0x68] sm:$0xff]  ;;  %v99_v5 = vld [vmem:[#allocation2 + $0x60] sm:$0xff]  ;;  %s322_s20 = smov [#allocation7]  }
   0xe   :  { %72 = vperm.xlu0 %234, %v60_v1   ;;  %106 = vmatpush.msra.mxu0 %v102_v2  ;;  %v59_v6 = vld [vmem:[%s399_s0] sm:$0xff]  ;;  %v98_v7 = vld [vmem:[#allocation2 + $0x58] sm:$0xff]  ;;  %v97_v8 = vld [vmem:[#allocation2 + $0x50] sm:$0xff]  ;;  %s180_s21 = sshll.u32 %s322_s20, 4  ;;  %s181_s21 = int_to_ptr.vmem [resolvable:$true] %s180_s21 }
   0xf   :  { %197 = vmatpush.msra.mxu2 %v101_v3  ;;  %v96_v9 = vld [vmem:[#allocation2 + $0x48] sm:$0xff]  ;;  %v95_v10 = vld [vmem:[#allocation2 + $0x40] sm:$0xff]  ;;  %v94_v11 = vld [vmem:[#allocation2 + $0x38] sm:$0xff] }
  0x10   :  { %107 = vmatpush.msra.mxu0 %v101_v3  ;;  %v93_v12 = vld [vmem:[#allocation2 + $0x30] sm:$0xff]  ;;  %v92_v13 = vld [vmem:[#allocation2 + $0x28] sm:$0xff]  ;;  %v91_v14 = vld [vmem:[#allocation2 + $0x20] sm:$0xff] }
  0x11   :  { %198 = vmatpush.msra.mxu2 %v100_v4  ;;  %v90_v15 = vld [vmem:[#allocation2 + $0x18] sm:$0xff]  ;;  %v89_v16 = vld [vmem:[#allocation2 + $0x10] sm:$0xff]  ;;  %v88_v17 = vld [vmem:[#allocation2 + $0x8] sm:$0xff] }
  0x12   :  { %108 = vmatpush.msra.mxu0 %v100_v4  ;;  %v87_v18 = vld [vmem:[#allocation2] sm:$0xff]  ;;  %v146_v19 = vld [vmem:[#allocation5 + $0x78] sm:$0xff]  ;;  %v145_v20 = vld [vmem:[#allocation5 + $0x70] sm:$0xff] }
  0x13   :  { %199 = vmatpush.msra.mxu2 %v99_v5  ;;  %212 = vmatpush.msra.mxu3 %v146_v19  ;;  %v144_v21 = vld [vmem:[#allocation5 + $0x68] sm:$0xff]  ;;  %v143_v22 = vld [vmem:[#allocation5 + $0x60] sm:$0xff]  ;;  %v142_v23 = vld [vmem:[#allocation5 + $0x58] sm:$0xff] }
  0x14   :  { %109 = vmatpush.msra.mxu0 %v99_v5  ;;  %150 = vmatpush.msra.mxu1 %v146_v19  ;;  %v141_v24 = vld [vmem:[#allocation5 + $0x50] sm:$0xff]  ;;  %v140_v25 = vld [vmem:[#allocation5 + $0x48] sm:$0xff]  ;;  %v139_v26 = vld [vmem:[#allocation5 + $0x40] sm:$0xff] }
  0x15   :  { %200 = vmatpush.msra.mxu2 %v98_v7  ;;  %213 = vmatpush.msra.mxu3 %v145_v20  ;;  %v235_v27 = vld [vmem:[%s400_s1] ss:$0 sm:$0xff]  ;;  %v138_v28 = vld [vmem:[#allocation5 + $0x38] sm:$0xff]  ;;  %v137_v30 = vld [vmem:[#allocation5 + $0x30] sm:$0xff] }
  0x16   :  { %67 = vperm.xlu0 %234, %v59_v6   ;;  %110 = vmatpush.msra.mxu0 %v98_v7  ;;  %v236_v29 = vld [vmem:[%s401_s2] ss:$0 sm:$0xff]  ;;  %v136_v33 = vld [vmem:[#allocation5 + $0x28] sm:$0xff]  ;;  %v134_v37 = vld [vmem:[#allocation5 + $0x18] sm:$0xff] }
  0x17   :  { %201 = vmatpush.msra.mxu2 %v97_v8  ;;  %151 = vmatpush.msra.mxu1 %v145_v20  ;;  %v135_v35 = vld [vmem:[#allocation5 + $0x20] sm:$0xff]  ;;  %v133_v42 = vld [vmem:[#allocation5 + $0x10] sm:$0xff]  ;;  %v132_v43 = vld [vmem:[#allocation5 + $0x8] sm:$0xff] }
  0x18   :  { %111 = vmatpush.msra.mxu0 %v97_v8  ;;  %214 = vmatpush.msra.mxu3 %v144_v21  ;;  %v131_v44 = vld [vmem:[#allocation5] sm:$0xff] }
  0x19   :  { %202 = vmatpush.msra.mxu2 %v96_v9  ;;  %152 = vmatpush.msra.mxu1 %v144_v21  ;;  %v237_v45 = vld [vmem:[%s403_s4] ss:$0 sm:$0xff]  ;;  %s182_s4 = sshll.u32 %s406_s7, 4  ;;  %s183_s4 = int_to_ptr.hbm [resolvable:$true] %s182_s4 }
  0x1a   :  { %112 = vmatpush.msra.mxu0 %v96_v9  ;;  %215 = vmatpush.msra.mxu3 %v143_v22  ;;  %v238_v52 = vld [vmem:[%s405_s6] ss:$0 sm:$0xff] }
  0x1b   :  { %203 = vmatpush.msra.mxu2 %v95_v10  ;;  %153 = vmatpush.msra.mxu1 %v143_v22 }
  0x1c   :  { %113 = vmatpush.msra.mxu0 %v95_v10  ;;  %216 = vmatpush.msra.mxu3 %v142_v23 }
  0x1d   :  { %204 = vmatpush.msra.mxu2 %v94_v11  ;;  %154 = vmatpush.msra.mxu1 %v142_v23 }
  0x1e   :  { %114 = vmatpush.msra.mxu0 %v94_v11  ;;  %217 = vmatpush.msra.mxu3 %v141_v24 }
  0x1f   :  { %205 = vmatpush.msra.mxu2 %v93_v12  ;;  %155 = vmatpush.msra.mxu1 %v141_v24 }
  0x20   :  { %115 = vmatpush.msra.mxu0 %v93_v12  ;;  %218 = vmatpush.msra.mxu3 %v140_v25 }
  0x21   :  { %206 = vmatpush.msra.mxu2 %v92_v13  ;;  %156 = vmatpush.msra.mxu1 %v140_v25 }
  0x22   :  { %116 = vmatpush.msra.mxu0 %v92_v13  ;;  %219 = vmatpush.msra.mxu3 %v139_v26 }
  0x23   :  { %207 = vmatpush.msra.mxu2 %v91_v14  ;;  %157 = vmatpush.msra.mxu1 %v139_v26 }
  0x24   :  { %117 = vmatpush.msra.mxu0 %v91_v14  ;;  %220 = vmatpush.msra.mxu3 %v138_v28 }
  0x25   :  { %208 = vmatpush.msra.mxu2 %v90_v15  ;;  %158 = vmatpush.msra.mxu1 %v138_v28 }
  0x26   :  { %118 = vmatpush.msra.mxu0 %v90_v15  ;;  %221 = vmatpush.msra.mxu3 %v137_v30 }
  0x27   :  { %209 = vmatpush.msra.mxu2 %v89_v16  ;;  %159 = vmatpush.msra.mxu1 %v137_v30 }
  0x28   :  { %119 = vmatpush.msra.mxu0 %v89_v16  ;;  %222 = vmatpush.msra.mxu3 %v136_v33 }
  0x29   :  { %210 = vmatpush.msra.mxu2 %v88_v17  ;;  %160 = vmatpush.msra.mxu1 %v136_v33 }
  0x2a   :  { %120 = vmatpush.msra.mxu0 %v88_v17  ;;  %223 = vmatpush.msra.mxu3 %v135_v35 }
  0x2b   :  { %211 = vmatpush.msra.mxu2 %v87_v18  ;;  %161 = vmatpush.msra.mxu1 %v135_v35 }
  0x2c   :  { %121 = vmatpush.msra.mxu0 %v87_v18  ;;  %224 = vmatpush.msra.mxu3 %v134_v37 }
  0x2d   :  { %162 = vmatpush.msra.mxu1 %v134_v37 }
  0x2e   :  { %225 = vmatpush.msra.mxu3 %v133_v42 }
  0x2f   :  { %163 = vmatpush.msra.mxu1 %v133_v42 }
  0x30   :  { %226 = vmatpush.msra.mxu3 %v132_v43 }
  0x31   :  { %164 = vmatpush.msra.mxu1 %v132_v43 }
  0x32   :  { %227 = vmatpush.msra.mxu3 %v131_v44 }
  0x33   :  { %165 = vmatpush.msra.mxu1 %v131_v44 }
  0x80   :  { %v73_v31 = vpop.permute.xlu0 %72 }
  0x81   :  { %v79_v32 = vmul.f32 %v235_v27, %v73_v31 }
  0x83   :  { %v84_v34 = vadd.f32 %v236_v29, %v79_v32 }
  0x85   :  { %v86_v36 = vmax.f32 %v84_v34, 0.0 }
  0x87   :  { %125 = vmatmul.f32.vlgmr.msra.gmra.mxu2 %v86_v36 }
  0x88   :  { %v68_v38 = vpop.permute.xlu0 %67 }
  0x89   :  { %v78_v39 = vmul.f32 %v235_v27, %v68_v38 }
  0x8b   :  { %v83_v40 = vadd.f32 %v236_v29, %v78_v39 }
  0x8d   :  { %v85_v41 = vmax.f32 %v83_v40, 0.0 }
  0x8f   :  { %122 = vmatmul.f32.vlgmr.msra.gmra.mxu0 %v85_v41 }
 0x10a   :  { %v126_v46 = vpop.f32.mrf.mxu2 }
 0x10b   :  { %v127_v47 = vadd.f32 %v237_v45, %v126_v46 }
 0x10c   :  { %v123_v48 = vpop.f32.mrf.mxu0 }
 0x10d   :  { %v130_v49 = vmax.f32 %v127_v47, 0.0  ;;  %v124_v50 = vadd.f32 %v237_v45, %v123_v48 }
 0x10f   :  { %v129_v51 = vmax.f32 %v124_v50, 0.0  ;;  %169 = vmatmul.f32.vlgmr.msra.gmra.mxu3 %v130_v49 }
 0x111   :  { %166 = vmatmul.f32.vlgmr.msra.gmra.mxu1 %v129_v51 }
 0x18e   :  { %v167_v53 = vpop.f32.mrf.mxu1 }
 0x18f   :  { %v168_v54 = vadd.f32 %v238_v52, %v167_v53 }
 0x191   :  { %174 = vst.msk [vmem:[#allocation7] sm:$0xff] %vm173_vm0, %v168_v54 }
 0x192   :  { %v170_v55 = vpop.f32.mrf.mxu3 }
 0x193   :  { %v171_v56 = vadd.f32 %v238_v52, %v170_v55 }
 0x195   :  { %175 = vst.msk [vmem:[#allocation7 + $0x8] sm:$0xff] %vm173_vm0, %v171_v56 }
 0x196   :  { %188 = dma.vmem_to_hbm [thread:$0]  %s181_s21, 256, %s183_s4, [#allocation4], %s318_s9, %s318_s9, %s319_s10  }
 0x197   :  { %315 = dma.done.wait [#allocation4], 256  }
 0x198   :  { %316 = vsyncadd [#allocation4], 4294967040 }
 0x199   :  { %193 = vsyncpa [#allocation3], 1 }
 0x19a   :  { %194 = vsyncpa [#allocation6], 1 }
 0x19b   :  { %195 = vsyncpa [#allocation4], 1 }

</bundles_post_ra>
